<compile_context>
chip_gen: v6e
topology: v6e:2x2x1
jax: 0.10.0
libtpu: 0.0.40
codegen_flags: <defaults>
</compile_context>

<pallas_src>
import jax
import jax.numpy as jnp
from jax.experimental import pallas as pl
from jax.experimental.pallas import tpu as pltpu

NSH = 9      # number of SH basis functions
C = 3        # lighting channels (RGB): sh_coeff is [B, 9, 3]
LANES = 128  # TPU vreg lane width


def _sh_light_kernel(coeff_ref, n_ref, light_ref):
    """One (batch, vertex-tile) grid step.

    coeff_ref : SMEM ref [B, NSH*C]        (whole sh_coeff, resident)
    n_ref     : VMEM ref [3, TILE_R, 128]  (vertex normals, channel-major)
    light_ref : VMEM ref [C, TILE_R, 128]  (per-vertex light, channel-major)
    """
    b = pl.program_id(0)

    nx = n_ref[0]          # (TILE_R, 128) dense f32 tiles
    ny = n_ref[1]
    nz = n_ref[2]

    # SH basis terms k = 1..8 (k = 0 is the constant term, folded into the
    # accumulator init).  Built lazily, one at a time (k-outer), so only
    # nx/ny/nz, the current basis term and the C accumulators are live.
    basis_fns = (
        lambda: nx,
        lambda: ny,
        lambda: nz,
        lambda: nx * ny,
        lambda: nx * nz,
        lambda: ny * nz,
        lambda: nx * nx - ny * ny,
        lambda: 3.0 * nz * nz - 1.0,
    )

    # k = 0: constant basis -> scalar splat of coeff[b, 0, c].
    acc = [jnp.full_like(nx, coeff_ref[b, c]) for c in range(C)]

    for k, fn in enumerate(basis_fns, start=1):
        bk = fn()
        for c in range(C):
            acc[c] = acc[c] + coeff_ref[b, k * C + c] * bk

    for c in range(C):
        light_ref[c] = acc[c]


def _round_up(x, m):
    return ((x + m - 1) // m) * m


def sh_vertex_light(vertex_normals, sh_coeff, *, tile_rows=512):
    """vertex_normals [B, V, 3], sh_coeff [B, 9, 3] -> channel-major light [B, 3, V]."""
    B, V, _ = vertex_normals.shape

    rows_needed = pl.cdiv(V, LANES)
    # Vertex-tile size (in 128-lane rows): multiple of 8 sublanes, clamped to
    # the problem size; default 512 rows (~64K verts, ~3 MiB double-buffered)
    # keeps blocks well under the scoped VMEM limit on v5e/v6e/v7x.
    tr = min(_round_up(tile_rows, 8), _round_up(rows_needed, 8))
    tr = max(tr, 8)
    R = _round_up(rows_needed, tr)
    V_pad = R * LANES
    num_tiles = R // tr

    # Channel-major + lane-dense repack of the vertex axis: [B, 3, R, 128].
    n_cv = jnp.transpose(vertex_normals, (0, 2, 1)).astype(jnp.float32)
    if V_pad != V:
        n_cv = jnp.pad(n_cv, ((0, 0), (0, 0), (0, V_pad - V)))
    n_4d = n_cv.reshape(B, 3, R, LANES)

    coeff = sh_coeff.reshape(B, NSH * C).astype(jnp.float32)

    light_4d = pl.pallas_call(
        _sh_light_kernel,
        out_shape=jax.ShapeDtypeStruct((B, C, R, LANES), jnp.float32),
        grid=(B, num_tiles),
        in_specs=[
            # Small coefficient table: whole array resident in SMEM.
            pl.BlockSpec(memory_space=pltpu.MemorySpace.SMEM),
            # Normals: lane-dense vertex tile per grid step.
            pl.BlockSpec((None, 3, tr, LANES), lambda b, t: (b, 0, t, 0)),
        ],
        out_specs=pl.BlockSpec((None, C, tr, LANES), lambda b, t: (b, 0, t, 0)),
        compiler_params=pltpu.CompilerParams(
            dimension_semantics=("parallel", "parallel")),
    )(coeff, n_4d)

    # [B, C, R, 128] -> [B, C, V]  (contiguous reshape; slice drops the pad).
    return light_4d.reshape(B, C, V_pad)[:, :, :V]


def sh_lighting(vertex_normals, faces, sh_coeff):
    """Pallas equivalent of SHLighting.forward.

    vertex_normals : [B, V, 3] float32
    faces          : [B, F, 3] int32   (per-face vertex indices)
    sh_coeff       : [B, 9, 3] float32
    returns face_ver_lights : [B, F, 3, 3]
    """
    light_cv = sh_vertex_light(vertex_normals, sh_coeff)        # [B, C, V]
    # Per-face vertex gather: data-dependent indexing glue kept in plain JAX.
    # Gathering straight from the channel-major light avoids transposing the
    # full [B, V, C] array; only the small gathered result is re-laid-out.
    # TODO(synk): fuse the face gather into the kernel (scalar-prefetch faces)
    # to remove the remaining light round-trip through HBM.
    gather = lambda l, f: jnp.transpose(jnp.take(l, f, axis=1), (1, 2, 0))
    return jax.vmap(gather)(light_cv, faces)                    # [B, F, 3, C]


if __name__ == "__main__":
    key = jax.random.PRNGKey(0)
    B, V, F = 2, 200, 64
    k1, k2, k3 = jax.random.split(key, 3)

    normals = jax.random.normal(k1, (B, V, 3), dtype=jnp.float32)
    normals = normals / jnp.linalg.norm(normals, axis=-1, keepdims=True)
    sh_coeff = jax.random.normal(k2, (B, NSH, C), dtype=jnp.float32)
    faces = jax.random.randint(k3, (B, F, 3), 0, V, dtype=jnp.int32)

    out = jax.block_until_ready(jax.jit(sh_lighting)(normals, faces, sh_coeff))

    # Pure-JAX reference mirroring the PyTorch forward exactly.
    nx, ny, nz = normals[..., 0], normals[..., 1], normals[..., 2]
    sh = jnp.stack([jnp.ones_like(nx), nx, ny, nz,
                    nx * ny, nx * nz, ny * nz,
                    nx ** 2 - ny ** 2, 3 * nz ** 2 - 1], axis=2)      # [B, V, 9]
    light_ref = jnp.sum(sh_coeff[:, None, :, :] * sh[:, :, :, None], axis=2)
    ref = jnp.stack([light_ref[b][faces[b]] for b in range(B)])       # [B, F, 3, 3]

    assert out.shape == (B, F, 3, C), out.shape
    assert out.dtype == jnp.float32
    assert jnp.allclose(out, ref, atol=1e-5, rtol=1e-5)
    print("KERNEL_OK")
</pallas_src>

<mosaic_0001>
module attributes {stable_mosaic.version = 11 : i64} {
  func.func @_sh_light_kernel(%arg0: i32, %arg1: i32, %arg2: memref<2x27xf32, #tpu.memory_space<smem>>, %arg3: memref<1x3x8x128xf32, #tpu.memory_space<vmem>>, %arg4: memref<1x3x8x128xf32, #tpu.memory_space<vmem>>) attributes {dimension_semantics = [#tpu.dimension_semantics<parallel>, #tpu.dimension_semantics<parallel>], iteration_bounds = array<i64: 2, 1>, scalar_prefetch = 0 : i64, scratch_operands = 0 : i64, tpu.core_type = #tpu.core_type<tc>, window_params = [{transform_indices = @transform_0, window_bounds = array<i64: 2, 27>}, {transform_indices = @transform_1, window_bounds = array<i64: 1, 3, 8, 128>}, {transform_indices = @transform_2, window_bounds = array<i64: 1, 3, 8, 128>}]} {
    %c0 = arith.constant 0 : index
    %c0_0 = arith.constant 0 : index
    %c0_1 = arith.constant 0 : index
    %c0_2 = arith.constant 0 : index
    %0 = vector.load %arg3[%c0, %c0_0, %c0_1, %c0_2] : memref<1x3x8x128xf32, #tpu.memory_space<vmem>>, vector<1x1x8x128xf32>
    %1 = vector.shape_cast %0 : vector<1x1x8x128xf32> to vector<8x128xf32>
    %c0_3 = arith.constant 0 : index
    %c1 = arith.constant 1 : index
    %c0_4 = arith.constant 0 : index
    %c0_5 = arith.constant 0 : index
    %2 = vector.load %arg3[%c0_3, %c1, %c0_4, %c0_5] : memref<1x3x8x128xf32, #tpu.memory_space<vmem>>, vector<1x1x8x128xf32>
    %3 = vector.shape_cast %2 : vector<1x1x8x128xf32> to vector<8x128xf32>
    %c0_6 = arith.constant 0 : index
    %c2 = arith.constant 2 : index
    %c0_7 = arith.constant 0 : index
    %c0_8 = arith.constant 0 : index
    %4 = vector.load %arg3[%c0_6, %c2, %c0_7, %c0_8] : memref<1x3x8x128xf32, #tpu.memory_space<vmem>>, vector<1x1x8x128xf32>
    %5 = vector.shape_cast %4 : vector<1x1x8x128xf32> to vector<8x128xf32>
    %6 = arith.index_cast %arg0 : i32 to index
    %c0_9 = arith.constant 0 : index
    %7 = memref.load %arg2[%6, %c0_9] : memref<2x27xf32, #tpu.memory_space<smem>>
    %8 = vector.broadcast %7 : f32 to vector<8x128xf32>
    %9 = arith.index_cast %arg0 : i32 to index
    %c1_10 = arith.constant 1 : index
    %10 = memref.load %arg2[%9, %c1_10] : memref<2x27xf32, #tpu.memory_space<smem>>
    %11 = vector.broadcast %10 : f32 to vector<8x128xf32>
    %12 = arith.index_cast %arg0 : i32 to index
    %c2_11 = arith.constant 2 : index
    %13 = memref.load %arg2[%12, %c2_11] : memref<2x27xf32, #tpu.memory_space<smem>>
    %14 = vector.broadcast %13 : f32 to vector<8x128xf32>
    %15 = arith.index_cast %arg0 : i32 to index
    %c3 = arith.constant 3 : index
    %16 = memref.load %arg2[%15, %c3] : memref<2x27xf32, #tpu.memory_space<smem>>
    %17 = vector.broadcast %16 : f32 to vector<8x128xf32>
    %18 = arith.mulf %17, %1 : vector<8x128xf32>
    %19 = arith.addf %8, %18 : vector<8x128xf32>
    %20 = arith.index_cast %arg0 : i32 to index
    %c4 = arith.constant 4 : index
    %21 = memref.load %arg2[%20, %c4] : memref<2x27xf32, #tpu.memory_space<smem>>
    %22 = vector.broadcast %21 : f32 to vector<8x128xf32>
    %23 = arith.mulf %22, %1 : vector<8x128xf32>
    %24 = arith.addf %11, %23 : vector<8x128xf32>
    %25 = arith.index_cast %arg0 : i32 to index
    %c5 = arith.constant 5 : index
    %26 = memref.load %arg2[%25, %c5] : memref<2x27xf32, #tpu.memory_space<smem>>
    %27 = vector.broadcast %26 : f32 to vector<8x128xf32>
    %28 = arith.mulf %27, %1 : vector<8x128xf32>
    %29 = arith.addf %14, %28 : vector<8x128xf32>
    %30 = arith.index_cast %arg0 : i32 to index
    %c6 = arith.constant 6 : index
    %31 = memref.load %arg2[%30, %c6] : memref<2x27xf32, #tpu.memory_space<smem>>
    %32 = vector.broadcast %31 : f32 to vector<8x128xf32>
    %33 = arith.mulf %32, %3 : vector<8x128xf32>
    %34 = arith.addf %19, %33 : vector<8x128xf32>
    %35 = arith.index_cast %arg0 : i32 to index
    %c7 = arith.constant 7 : index
    %36 = memref.load %arg2[%35, %c7] : memref<2x27xf32, #tpu.memory_space<smem>>
    %37 = vector.broadcast %36 : f32 to vector<8x128xf32>
    %38 = arith.mulf %37, %3 : vector<8x128xf32>
    %39 = arith.addf %24, %38 : vector<8x128xf32>
    %40 = arith.index_cast %arg0 : i32 to index
    %c8 = arith.constant 8 : index
    %41 = memref.load %arg2[%40, %c8] : memref<2x27xf32, #tpu.memory_space<smem>>
    %42 = vector.broadcast %41 : f32 to vector<8x128xf32>
    %43 = arith.mulf %42, %3 : vector<8x128xf32>
    %44 = arith.addf %29, %43 : vector<8x128xf32>
    %45 = arith.index_cast %arg0 : i32 to index
    %c9 = arith.constant 9 : index
    %46 = memref.load %arg2[%45, %c9] : memref<2x27xf32, #tpu.memory_space<smem>>
    %47 = vector.broadcast %46 : f32 to vector<8x128xf32>
    %48 = arith.mulf %47, %5 : vector<8x128xf32>
    %49 = arith.addf %34, %48 : vector<8x128xf32>
    %50 = arith.index_cast %arg0 : i32 to index
    %c10 = arith.constant 10 : index
    %51 = memref.load %arg2[%50, %c10] : memref<2x27xf32, #tpu.memory_space<smem>>
    %52 = vector.broadcast %51 : f32 to vector<8x128xf32>
    %53 = arith.mulf %52, %5 : vector<8x128xf32>
    %54 = arith.addf %39, %53 : vector<8x128xf32>
    %55 = arith.index_cast %arg0 : i32 to index
    %c11 = arith.constant 11 : index
    %56 = memref.load %arg2[%55, %c11] : memref<2x27xf32, #tpu.memory_space<smem>>
    %57 = vector.broadcast %56 : f32 to vector<8x128xf32>
    %58 = arith.mulf %57, %5 : vector<8x128xf32>
    %59 = arith.addf %44, %58 : vector<8x128xf32>
    %60 = arith.mulf %1, %3 : vector<8x128xf32>
    %61 = arith.index_cast %arg0 : i32 to index
    %c12 = arith.constant 12 : index
    %62 = memref.load %arg2[%61, %c12] : memref<2x27xf32, #tpu.memory_space<smem>>
    %63 = vector.broadcast %62 : f32 to vector<8x128xf32>
    %64 = arith.mulf %63, %60 : vector<8x128xf32>
    %65 = arith.addf %49, %64 : vector<8x128xf32>
    %66 = arith.index_cast %arg0 : i32 to index
    %c13 = arith.constant 13 : index
    %67 = memref.load %arg2[%66, %c13] : memref<2x27xf32, #tpu.memory_space<smem>>
    %68 = vector.broadcast %67 : f32 to vector<8x128xf32>
    %69 = arith.mulf %68, %60 : vector<8x128xf32>
    %70 = arith.addf %54, %69 : vector<8x128xf32>
    %71 = arith.index_cast %arg0 : i32 to index
    %c14 = arith.constant 14 : index
    %72 = memref.load %arg2[%71, %c14] : memref<2x27xf32, #tpu.memory_space<smem>>
    %73 = vector.broadcast %72 : f32 to vector<8x128xf32>
    %74 = arith.mulf %73, %60 : vector<8x128xf32>
    %75 = arith.addf %59, %74 : vector<8x128xf32>
    %76 = arith.mulf %1, %5 : vector<8x128xf32>
    %77 = arith.index_cast %arg0 : i32 to index
    %c15 = arith.constant 15 : index
    %78 = memref.load %arg2[%77, %c15] : memref<2x27xf32, #tpu.memory_space<smem>>
    %79 = vector.broadcast %78 : f32 to vector<8x128xf32>
    %80 = arith.mulf %79, %76 : vector<8x128xf32>
    %81 = arith.addf %65, %80 : vector<8x128xf32>
    %82 = arith.index_cast %arg0 : i32 to index
    %c16 = arith.constant 16 : index
    %83 = memref.load %arg2[%82, %c16] : memref<2x27xf32, #tpu.memory_space<smem>>
    %84 = vector.broadcast %83 : f32 to vector<8x128xf32>
    %85 = arith.mulf %84, %76 : vector<8x128xf32>
    %86 = arith.addf %70, %85 : vector<8x128xf32>
    %87 = arith.index_cast %arg0 : i32 to index
    %c17 = arith.constant 17 : index
    %88 = memref.load %arg2[%87, %c17] : memref<2x27xf32, #tpu.memory_space<smem>>
    %89 = vector.broadcast %88 : f32 to vector<8x128xf32>
    %90 = arith.mulf %89, %76 : vector<8x128xf32>
    %91 = arith.addf %75, %90 : vector<8x128xf32>
    %92 = arith.mulf %3, %5 : vector<8x128xf32>
    %93 = arith.index_cast %arg0 : i32 to index
    %c18 = arith.constant 18 : index
    %94 = memref.load %arg2[%93, %c18] : memref<2x27xf32, #tpu.memory_space<smem>>
    %95 = vector.broadcast %94 : f32 to vector<8x128xf32>
    %96 = arith.mulf %95, %92 : vector<8x128xf32>
    %97 = arith.addf %81, %96 : vector<8x128xf32>
    %98 = arith.index_cast %arg0 : i32 to index
    %c19 = arith.constant 19 : index
    %99 = memref.load %arg2[%98, %c19] : memref<2x27xf32, #tpu.memory_space<smem>>
    %100 = vector.broadcast %99 : f32 to vector<8x128xf32>
    %101 = arith.mulf %100, %92 : vector<8x128xf32>
    %102 = arith.addf %86, %101 : vector<8x128xf32>
    %103 = arith.index_cast %arg0 : i32 to index
    %c20 = arith.constant 20 : index
    %104 = memref.load %arg2[%103, %c20] : memref<2x27xf32, #tpu.memory_space<smem>>
    %105 = vector.broadcast %104 : f32 to vector<8x128xf32>
    %106 = arith.mulf %105, %92 : vector<8x128xf32>
    %107 = arith.addf %91, %106 : vector<8x128xf32>
    %108 = arith.mulf %1, %1 : vector<8x128xf32>
    %109 = arith.mulf %3, %3 : vector<8x128xf32>
    %110 = arith.subf %108, %109 : vector<8x128xf32>
    %111 = arith.index_cast %arg0 : i32 to index
    %c21 = arith.constant 21 : index
    %112 = memref.load %arg2[%111, %c21] : memref<2x27xf32, #tpu.memory_space<smem>>
    %113 = vector.broadcast %112 : f32 to vector<8x128xf32>
    %114 = arith.mulf %113, %110 : vector<8x128xf32>
    %115 = arith.addf %97, %114 : vector<8x128xf32>
    %116 = arith.index_cast %arg0 : i32 to index
    %c22 = arith.constant 22 : index
    %117 = memref.load %arg2[%116, %c22] : memref<2x27xf32, #tpu.memory_space<smem>>
    %118 = vector.broadcast %117 : f32 to vector<8x128xf32>
    %119 = arith.mulf %118, %110 : vector<8x128xf32>
    %120 = arith.addf %102, %119 : vector<8x128xf32>
    %121 = arith.index_cast %arg0 : i32 to index
    %c23 = arith.constant 23 : index
    %122 = memref.load %arg2[%121, %c23] : memref<2x27xf32, #tpu.memory_space<smem>>
    %123 = vector.broadcast %122 : f32 to vector<8x128xf32>
    %124 = arith.mulf %123, %110 : vector<8x128xf32>
    %125 = arith.addf %107, %124 : vector<8x128xf32>
    %cst = arith.constant 3.000000e+00 : f32
    %126 = vector.broadcast %cst : f32 to vector<8x128xf32>
    %127 = arith.mulf %126, %5 : vector<8x128xf32>
    %128 = arith.mulf %127, %5 : vector<8x128xf32>
    %cst_12 = arith.constant 1.000000e+00 : f32
    %129 = vector.broadcast %cst_12 : f32 to vector<8x128xf32>
    %130 = arith.subf %128, %129 : vector<8x128xf32>
    %131 = arith.index_cast %arg0 : i32 to index
    %c24 = arith.constant 24 : index
    %132 = memref.load %arg2[%131, %c24] : memref<2x27xf32, #tpu.memory_space<smem>>
    %133 = vector.broadcast %132 : f32 to vector<8x128xf32>
    %134 = arith.mulf %133, %130 : vector<8x128xf32>
    %135 = arith.addf %115, %134 : vector<8x128xf32>
    %136 = arith.index_cast %arg0 : i32 to index
    %c25 = arith.constant 25 : index
    %137 = memref.load %arg2[%136, %c25] : memref<2x27xf32, #tpu.memory_space<smem>>
    %138 = vector.broadcast %137 : f32 to vector<8x128xf32>
    %139 = arith.mulf %138, %130 : vector<8x128xf32>
    %140 = arith.addf %120, %139 : vector<8x128xf32>
    %141 = arith.index_cast %arg0 : i32 to index
    %c26 = arith.constant 26 : index
    %142 = memref.load %arg2[%141, %c26] : memref<2x27xf32, #tpu.memory_space<smem>>
    %143 = vector.broadcast %142 : f32 to vector<8x128xf32>
    %144 = arith.mulf %143, %130 : vector<8x128xf32>
    %145 = arith.addf %125, %144 : vector<8x128xf32>
    %c0_13 = arith.constant 0 : index
    %c0_14 = arith.constant 0 : index
    %c0_15 = arith.constant 0 : index
    %c0_16 = arith.constant 0 : index
    %146 = vector.load %arg4[%c0_13, %c0_14, %c0_15, %c0_16] : memref<1x3x8x128xf32, #tpu.memory_space<vmem>>, vector<1x1x8x128xf32>
    %147 = vector.shape_cast %146 : vector<1x1x8x128xf32> to vector<8x128xf32>
    %148 = vector.shape_cast %135 : vector<8x128xf32> to vector<1x1x8x128xf32>
    tpu.vector_store %arg4[%c0_13, %c0_14, %c0_15, %c0_16], %148 {strides = array<i32>} : memref<1x3x8x128xf32, #tpu.memory_space<vmem>>, vector<1x1x8x128xf32>,
    %c0_17 = arith.constant 0 : index
    %c1_18 = arith.constant 1 : index
    %c0_19 = arith.constant 0 : index
    %c0_20 = arith.constant 0 : index
    %149 = vector.load %arg4[%c0_17, %c1_18, %c0_19, %c0_20] : memref<1x3x8x128xf32, #tpu.memory_space<vmem>>, vector<1x1x8x128xf32>
    %150 = vector.shape_cast %149 : vector<1x1x8x128xf32> to vector<8x128xf32>
    %151 = vector.shape_cast %140 : vector<8x128xf32> to vector<1x1x8x128xf32>
    tpu.vector_store %arg4[%c0_17, %c1_18, %c0_19, %c0_20], %151 {strides = array<i32>} : memref<1x3x8x128xf32, #tpu.memory_space<vmem>>, vector<1x1x8x128xf32>,
    %c0_21 = arith.constant 0 : index
    %c2_22 = arith.constant 2 : index
    %c0_23 = arith.constant 0 : index
    %c0_24 = arith.constant 0 : index
    %152 = vector.load %arg4[%c0_21, %c2_22, %c0_23, %c0_24] : memref<1x3x8x128xf32, #tpu.memory_space<vmem>>, vector<1x1x8x128xf32>
    %153 = vector.shape_cast %152 : vector<1x1x8x128xf32> to vector<8x128xf32>
    %154 = vector.shape_cast %145 : vector<8x128xf32> to vector<1x1x8x128xf32>
    tpu.vector_store %arg4[%c0_21, %c2_22, %c0_23, %c0_24], %154 {strides = array<i32>} : memref<1x3x8x128xf32, #tpu.memory_space<vmem>>, vector<1x1x8x128xf32>,
    return
  }
  func.func @transform_0(%arg0: i32, %arg1: i32) -> (i32, i32) {
    %c0_i32 = arith.constant 0 : i32
    %c0_i32_0 = arith.constant 0 : i32
    %c0_i32_1 = arith.constant 0 : i32
    return %c0_i32, %c0_i32_0 : i32, i32
  }
  func.func @transform_1(%arg0: i32, %arg1: i32) -> (i32, i32, i32, i32) {
    %c0_i32 = arith.constant 0 : i32
    %c0_i32_0 = arith.constant 0 : i32
    %c0_i32_1 = arith.constant 0 : i32
    return %arg0, %c0_i32, %arg1, %c0_i32_0 : i32, i32, i32, i32
  }
  func.func @transform_2(%arg0: i32, %arg1: i32) -> (i32, i32, i32, i32) {
    %c0_i32 = arith.constant 0 : i32
    %c0_i32_0 = arith.constant 0 : i32
    %c0_i32_1 = arith.constant 0 : i32
    return %arg0, %c0_i32, %arg1, %c0_i32_0 : i32, i32, i32, i32
  }
}

</mosaic_0001>

<bundles_post_ra>
// kernel: sh_lighting.1
= control target key start
LH: loop header
LB: loop body
LE: loop exit
PB: predicated region body
PF: predicated region fallthrough
CT: control target
= control target key end

     0   :  { %7 = vsyncpa [#allocation3], 0  ;;  %s545_s9 = smov 0   ;;  %s547_s10 = smov 0   ;;  %s742_s0 = inlined_call_operand.vmem [shape: f32[2,27], index: 0, kind: input, shape index: {}]   ;;  %s743_s1 = inlined_call_operand.vmem [shape: f32[2,3,8,128], index: 1, kind: input, shape index: {}]   ;;  %s744_s2 = inlined_call_operand.vmem [shape: f32[2,3,8,128], index: 2, kind: output, shape index: {}]  }
   0x1   :  { %s549_s11 = smov 0  }
   0x2 LB: > { %s433_s12 = sadd.s32 4294967295, %s527_s11   ;;  %s25_s13 = sadd.s32 1, %s523_s10  ;;  %s527_s11 = sphi %s549_s11, %s13_s11   ;;  %s523_s10 = sphi %s547_s10, %s748_s10   ;;  %s519_s9 = sphi %s545_s9, %s747_s9  }
   0x3   : > { %p27_p0 = scmp.ge.s32.totalorder %s25_s13, 2  ;;  %p435_p1 = scmp.ge.s32.totalorder %s527_s11, 1 }
   0x4   : > { %p107_p2 = scmp.lt.s32.totalorder %s527_s11, 3  ;;  %p570_p4 = scmp.eq.s32.totalorder %s433_s12, 0 }
   0x5   : > { %s750_s13 = smov (%p27_p0, %s25_s13), 0  ;;  %s120_s18 = sshll.u32 %s742_s0, 4  ;;  %s121_s18 = int_to_ptr.vmem [resolvable:$true] %s120_s18 }
   0x6   : > { %p566_p3 = pnand %p435_p1, %p107_p2  ;;  %s486_s19 = scalar_lea.vmem %s121_s18, 32 }
   0x7   : > { %p487_p7 = scmp.ne.s32.totalorder %s121_s18, %s486_s19  ;;  %p494_p11 = scmp.lt.s32.totalorder %s121_s18, %s121_s18 }
   0x8   : > { %p455_p5 = pneg %p566_p3  ;;  %p495_p12 = scmp.lt.s32.totalorder %s486_s19, %s486_s19 }
   0xa   : > { %p456_p6 = pnand %p570_p4, %p455_p5  ;;  %p496_p13 = por %p495_p12, %p494_p11 }
   0xc   : > { %p488_p8 = pneg %p456_p6 }
   0xe   : > { %p489_p9 = pnand %p488_p8, %p487_p7 }
  0x10   : > { %p490_p10 = pneg %p489_p9 }
  0x12   : > { %p497_p0 = pnand %p496_p13, %p490_p10 }
  0x14   : > { %500 = shalt.err (!%p497_p0)
}
  0x15   : > { %s529_s20 = smov [#allocation2]   ;;  %144 = sbr.rel (%p566_p3) target bundleno = 76 (0x4c), region = 28 }
  0x16   : > { %458 = dma.vmem_to_smem (!%p456_p6), %s121_s18, 32, %s529_s20, [#allocation3]  }
  0x1a   : > { %514 = dma.done.wait (%p570_p4), [#allocation3], 32  }
  0x1b   : > { %516 = vsyncadd (%p570_p4), [#allocation3], 4294967264 }
  0x1c   : > { %150 = sfence }
  0x1d   : > { %p173_p1 = scmp.lt.s32.totalorder %s519_s9, 1  ;;  %s589_s21 = sshll.u32 %s519_s9, 7 }
  0x1e   : > { %s592_s22 = sld [smem:[#allocation2 + %s589_s21]]  ;;  %s203_s23 = sadd.s32 3, %s589_s21 }
  0x1f   : > { %s752_s9 = smov (!%p173_p1, %s519_s9), 1  ;;  %s204_s24 = sld [smem:[#allocation2 + %s203_s23]] }
  0x20   : > { %s208_s25 = sadd.s32 4, %s589_s21  ;;  %s450_s26 = smul.u32 24, %s752_s9 }
  0x21   : > { %s597_s27 = sld [smem:[#allocation2 + %s208_s25]]  ;;  %s213_s28 = sadd.s32 5, %s589_s21 }
  0x22   : > { %s218_s29 = sadd.s32 6, %s589_s21  ;;  %s180_s4 = scalar_lea.vmem %s743_s1, %s450_s26 }
  0x23   : > { %s607_s7 = scalar_lea.vmem %s744_s2, %s450_s26  ;;  %v609_v0 = vld [vmem:[%s180_s4] sm:$0xff]  ;;  %s611_s8 = sld [smem:[#allocation2 + %s213_s28]]  ;;  %v619_v4 = vld [vmem:[%s180_s4 + $0x10] sm:$0xff]  ;;  %v624_v5 = vld [vmem:[%s180_s4 + $0x8] sm:$0xff] }
  0x24   : > { %s233_s9 = sadd.s32 9, %s589_s21  ;;  %s219_s12 = sld [smem:[#allocation2 + %s218_s29]]  ;;  %v196_v2 = vstv %s592_s22  ;;  %v314_v6 = vmul.f32 3.0, %v619_v4  ;;  %v632_v8 = vmul.f32 %v624_v5, %v609_v0  ;;  %v639_v10 = vmul.f32 %v619_v4, %v609_v0 }
  0x25   : > { %s249_s14 = sadd.s32 12, %s589_s21  ;;  %v205_v1 = vstv %s204_s24  ;;  %s234_s15 = sld [smem:[#allocation2 + %s233_s9]]  ;;  %v296_v11 = vmul.f32 %v609_v0, %v609_v0  ;;  %v297_v15 = vmul.f32 %v624_v5, %v624_v5  ;;  %v662_v22 = vmul.f32 %v619_v4, %v624_v5 }
  0x26   : > { %s265_s16 = sadd.s32 15, %s589_s21  ;;  %v206_v3 = vmul.f32 %v205_v1, %v609_v0  ;;  %s250_s17 = sld [smem:[#allocation2 + %s249_s14]]  ;;  %v315_v18 = vmul.f32 %v619_v4, %v314_v6 }
  0x27   : > { %s281_s18 = sadd.s32 18, %s589_s21  ;;  %s621_s19 = sld [smem:[#allocation2 + %s265_s16]]  ;;  %v210_v12 = vstv %s597_s27  ;;  %v673_v27 = vsub.f32 %v296_v11, %v297_v15 }
  0x28   : > { %s299_s20 = sadd.s32 21, %s589_s21  ;;  %s626_s23 = sld [smem:[#allocation2 + %s281_s18]]  ;;  %v207_v7 = vadd.f32 %v206_v3, %v196_v2  ;;  %v211_v23 = vmul.f32 %v210_v12, %v609_v0  ;;  %v679_v29 = vadd.f32 -1.0, %v315_v18 }
  0x29   : > { %s317_s24 = sadd.s32 24, %s589_s21  ;;  %s634_s22 = sld [smem:[#allocation2 + %s299_s20]]  ;;  %v215_v34 = vstv %s611_s8 }
  0x2a   : > { %s197_s25 = sadd.s32 1, %s589_s21  ;;  %v220_v9 = vstv %s219_s12  ;;  %s643_s26 = sld [smem:[#allocation2 + %s317_s24]]  ;;  %v216_v48 = vmul.f32 %v215_v34, %v609_v0 }
  0x2b   : > { %s223_s28 = sadd.s32 7, %s589_s21  ;;  %v221_v13 = vmul.f32 %v624_v5, %v220_v9  ;;  %v235_v14 = vstv %s234_s15  ;;  %s650_s29 = sld [smem:[#allocation2 + %s197_s25]] }
  0x2c   : > { %s238_s30 = sadd.s32 10, %s589_s21  ;;  %v236_v16 = vmul.f32 %v619_v4, %v235_v14  ;;  %v251_v17 = vstv %s250_s17  ;;  %s655_s3 = sld [smem:[#allocation2 + %s223_s28]] }
  0x2d   : > { %s254_s27 = sadd.s32 13, %s589_s21  ;;  %v222_v19 = vadd.f32 %v221_v13, %v207_v7  ;;  %v252_v20 = vmul.f32 %v251_v17, %v632_v8  ;;  %v267_v21 = vstv %s621_s19  ;;  %s664_s4 = sld [smem:[#allocation2 + %s238_s30]] }
  0x2e   : > { %s270_s5 = sadd.s32 16, %s589_s21  ;;  %v283_v24 = vstv %s626_s23  ;;  %s669_s6 = sld [smem:[#allocation2 + %s254_s27]]  ;;  %v268_v26 = vmul.f32 %v267_v21, %v639_v10 }
  0x2f   : > { %s286_s9 = sadd.s32 19, %s589_s21  ;;  %v237_v25 = vadd.f32 %v236_v16, %v222_v19  ;;  %s675_s12 = sld [smem:[#allocation2 + %s270_s5]]  ;;  %v301_v28 = vstv %s634_s22  ;;  %v284_v31 = vmul.f32 %v283_v24, %v662_v22 }
  0x30   : > { %s304_s14 = sadd.s32 22, %s589_s21  ;;  %s681_s15 = sld [smem:[#allocation2 + %s286_s9]]  ;;  %v319_v32 = vstv %s643_s26  ;;  %v302_v38 = vmul.f32 %v301_v28, %v673_v27 }
  0x31   : > { %s322_s16 = sadd.s32 25, %s589_s21  ;;  %v253_v30 = vadd.f32 %v252_v20, %v237_v25  ;;  %v199_v33 = vstv %s650_s29  ;;  %s687_s17 = sld [smem:[#allocation2 + %s304_s14]]  ;;  %v320_v41 = vmul.f32 %v679_v29, %v319_v32 }
  0x32   : > { %s200_s18 = sadd.s32 2, %s589_s21  ;;  %v212_v35 = vadd.f32 %v211_v23, %v199_v33  ;;  %v225_v36 = vstv %s655_s3  ;;  %s692_s19 = sld [smem:[#allocation2 + %s322_s16]] }
  0x33   : > { %s228_s20 = sadd.s32 8, %s589_s21  ;;  %v269_v37 = vadd.f32 %v268_v26, %v253_v30  ;;  %v226_v39 = vmul.f32 %v624_v5, %v225_v36  ;;  %v240_v40 = vstv %s664_s4  ;;  %s698_s23 = sld [smem:[#allocation2 + %s200_s18]] }
  0x34   : > { %s243_s24 = sadd.s32 11, %s589_s21  ;;  %v241_v42 = vmul.f32 %v619_v4, %v240_v40  ;;  %v256_v43 = vstv %s669_s6  ;;  %s704_s8 = sld [smem:[#allocation2 + %s228_s20]] }
  0x35   : > { %s259_s22 = sadd.s32 14, %s589_s21  ;;  %v285_v44 = vadd.f32 %v284_v31, %v269_v37  ;;  %v227_v45 = vadd.f32 %v226_v39, %v212_v35  ;;  %v257_v46 = vmul.f32 %v256_v43, %v632_v8  ;;  %v272_v47 = vstv %s675_s12  ;;  %s244_s25 = sld [smem:[#allocation2 + %s243_s24]] }
  0x36   : > { %s275_s26 = sadd.s32 17, %s589_s21  ;;  %v288_v49 = vstv %s681_s15  ;;  %s260_s28 = sld [smem:[#allocation2 + %s259_s22]]  ;;  %v273_v52 = vmul.f32 %v272_v47, %v639_v10 }
  0x37   : > { %s291_s29 = sadd.s32 20, %s589_s21  ;;  %v303_v50 = vadd.f32 %v302_v38, %v285_v44  ;;  %v242_v51 = vadd.f32 %v241_v42, %v227_v45  ;;  %s276_s30 = sld [smem:[#allocation2 + %s275_s26]]  ;;  %v289_v53 = vmul.f32 %v288_v49, %v662_v22  ;;  %v306_v54 = vstv %s687_s17 }
  0x38   : > { %s309_s3 = sadd.s32 23, %s589_s21  ;;  %s292_s27 = sld [smem:[#allocation2 + %s291_s29]]  ;;  %v324_v57 = vstv %s692_s19  ;;  %v307_v62 = vmul.f32 %v306_v54, %v673_v27 }
  0x39   : > { %s327_s4 = sadd.s32 26, %s589_s21  ;;  %v321_v55 = vadd.f32 %v320_v41, %v303_v50  ;;  %v258_v56 = vadd.f32 %v257_v46, %v242_v51  ;;  %v202_v58 = vstv %s698_s23  ;;  %s310_s5 = sld [smem:[#allocation2 + %s309_s3]]  ;;  %v325_v1 = vmul.f32 %v679_v29, %v324_v57 }
  0x3a   : > { %v217_v59 = vadd.f32 %v216_v48, %v202_v58  ;;  %v230_v60 = vstv %s704_s8  ;;  %s328_s6 = sld [smem:[#allocation2 + %s327_s4]] }
  0x3b   : > { %332 = vst [vmem:[%s607_s7] sm:$0xff] %v321_v55  ;;  %v274_v61 = vadd.f32 %v273_v52, %v258_v56  ;;  %v231_v63 = vmul.f32 %v624_v5, %v230_v60  ;;  %v245_v0 = vstv %s244_s25 }
  0x3c   : > { %v246_v2 = vmul.f32 %v619_v4, %v245_v0  ;;  %v261_v3 = vstv %s260_s28 }
  0x3d   : > { %v290_v6 = vadd.f32 %v289_v53, %v274_v61  ;;  %v232_v7 = vadd.f32 %v231_v63, %v217_v59  ;;  %v262_v9 = vmul.f32 %v261_v3, %v632_v8  ;;  %v277_v11 = vstv %s276_s30 }
  0x3e   : > { %v293_v12 = vstv %s292_s27  ;;  %v278_v15 = vmul.f32 %v277_v11, %v639_v10 }
  0x3f   : > { %v308_v13 = vadd.f32 %v307_v62, %v290_v6  ;;  %v247_v14 = vadd.f32 %v246_v2, %v232_v7  ;;  %v311_v16 = vstv %s310_s5  ;;  %v294_v18 = vmul.f32 %v293_v12, %v662_v22 }
  0x40   : > { %v329_v19 = vstv %s328_s6  ;;  %v312_v20 = vmul.f32 %v311_v16, %v673_v27 }
  0x41   : > { %v326_v5 = vadd.f32 %v325_v1, %v308_v13  ;;  %v263_v17 = vadd.f32 %v262_v9, %v247_v14  ;;  %v330_v8 = vmul.f32 %v679_v29, %v329_v19 }
  0x43   : > { %446 = vst [vmem:[%s607_s7 + $0x8] sm:$0xff] %v326_v5  ;;  %v279_v4 = vadd.f32 %v278_v15, %v263_v17 }
  0x45   : > { %v295_v21 = vadd.f32 %v294_v18, %v279_v4 }
  0x47   : > { %v313_v23 = vadd.f32 %v312_v20, %v295_v21 }
  0x49   : > { %v331_v24 = vadd.f32 %v330_v8, %v313_v23 }
  0x4b   : > { %447 = vst [vmem:[%s607_s7 + $0x10] sm:$0xff] %v331_v24 }
  0x4c PF: > { %s13_s11 = sadd.s32 1, %s527_s11   ;;  %s747_s9 = smov %s523_s10 }
  0x4d   : > { %p10_p2 = scmp.ge.s32.totalorder %s13_s11, 4   ;;  %s748_s10 = smov %s750_s13 }
  0x4f   :  { %12 = sbr.rel (!%p10_p2) target bundleno = 2 (0x2), region = 67 }
  0x54   :  { %364 = vsyncpa [#allocation3], 1 }
  0x55   :  { %366 = vsyncpa [#allocation3 + $0x1], 1 }

</bundles_post_ra>
